<compile_context>
chip_gen: v5e
topology: v5e:2x2
jax: 0.10.0
libtpu: 0.0.40
codegen_flags: <defaults>
</compile_context>

<pallas_src>
import functools

import jax
import jax.numpy as jnp
from jax.experimental import pallas as pl
from jax.experimental.pallas import tpu as pltpu


def _choose_spatial_tile(hw, n_classes, itemsize, *, block_budget_bytes=6 << 20,
                         max_tile=None):
    """Pick a spatial tile (in lanes).

    Preference order:
      1. whole HW in a single block when it fits the budget,
      2. the largest multiple-of-128 DIVISOR of HW that fits (no ragged last tile),
      3. the largest multiple of 128 that fits (ragged last tile, masked in-kernel).
    ~6 MiB logits blocks keep 2x(logits) + 2x(labels) + scratch under ~16 MiB even
    for small C, which is safe on v5e/v6e/v7x scoped VMEM (limit raised to 32 MiB).
    """
    cap = block_budget_bytes // max(1, n_classes * itemsize)
    if max_tile is not None:
        cap = min(cap, int(max_tile))
    cap = max(128, (cap // 128) * 128)
    if hw <= cap:
        return hw                                   # single full block
    if hw % 128 == 0:
        n128 = hw // 128
        best = 0
        d = 1
        while d * d <= n128:
            if n128 % d == 0:
                for q in (d, n128 // d):
                    t = q * 128
                    if t <= cap and t > best:
                        best = t
            d += 1
        if best:
            return best                             # exact divisor -> no ragged tile
    return cap                                      # ragged last tile, masked in-kernel


def _miou_kernel(min_ref, logits_ref, labels_ref, out_ref, inter_acc, union_acc,
                 *, ignore_index, hw, tile, needs_mask, approx):
    t = pl.program_id(1)                            # spatial-tile index (reduction axis)
    last = pl.num_programs(1) - 1

    @pl.when(t == 0)
    def _():
        inter_acc[...] = jnp.zeros_like(inter_acc)
        union_acc[...] = jnp.zeros_like(union_acc)

    def body(masked):
        x = logits_ref[0].astype(jnp.float32)       # (C, T) cast from native dtype
        lab = labels_ref[0]                         # (1, T) int32
        # target[target == ignore_index] = target.min()   (min of ORIGINAL labels)
        lab = jnp.where(lab == ignore_index, min_ref[0], lab)

        # softmax over the class (sublane) axis == F.softmax(inputs, dim=1)
        m = jnp.max(x, axis=0, keepdims=True)       # (1, T)
        e = jnp.exp(x - m)                          # (C, T)
        zinv = pl.reciprocal(jnp.sum(e, axis=0, keepdims=True), approx=approx)
        p = e * zinv                                # (C, T)

        # one-hot via (C,1) iota vs (1,T) labels — no (C,T) iota materialised
        cls_idx = jax.lax.broadcasted_iota(jnp.int32, (x.shape[0], 1), 0)
        onehot = cls_idx == lab                     # (C, T) bool

        if masked:
            lane = jax.lax.broadcasted_iota(jnp.int32, (1, tile), 1)
            valid = (t * tile + lane) < hw          # (1, T) lane-validity mask
            onehot = jnp.logical_and(onehot, valid)
            # p mask must stay: keeps NaN/garbage from padded-lane logits out of union
            p = jnp.where(valid, p, 0.0)

        # inter = sum(p*onehot); union = sum(p + onehot - p*onehot) = sum(where(onehot,1,p))
        inter_acc[...] += jnp.sum(jnp.where(onehot, p, 0.0), axis=1, keepdims=True)
        union_acc[...] += jnp.sum(jnp.where(onehot, 1.0, p), axis=1, keepdims=True)

    if needs_mask:
        # Only the final (ragged) tile pays for the mask; full tiles take the lean path.
        @pl.when(t < last)
        def _():
            body(masked=False)

        @pl.when(t == last)
        def _():
            body(masked=True)
    else:
        body(masked=False)

    @pl.when(t == last)
    def _():
        out_ref[0] = inter_acc[...] / union_acc[...]   # per-class IoU for this batch


def miou_loss(logits, labels, *, ignore_index=255, spatial_tile=None,
              approx_reciprocal=True):
    """logits: (N, C, H, W) float (any dtype); labels: (N, H, W) int. Returns scalar."""
    N, C, H, W = logits.shape
    HW = H * W

    logits_r = logits.reshape(N, C, HW)             # native dtype (bf16 stays bf16)
    labels_i = labels.astype(jnp.int32)
    # PyTorch evaluates .min() on the ORIGINAL label tensor (before replacement).
    min_label = jnp.min(labels_i).reshape(1)
    labels_r = labels_i.reshape(N, 1, HW)

    if spatial_tile is None:
        tile = _choose_spatial_tile(HW, C, logits_r.dtype.itemsize)
    else:
        tile = min(int(spatial_tile), HW)
    num_tiles = pl.cdiv(HW, tile)
    needs_mask = (HW % tile) != 0

    kernel = functools.partial(
        _miou_kernel, ignore_index=ignore_index, hw=HW, tile=tile,
        needs_mask=needs_mask, approx=approx_reciprocal,
    )

    out = pl.pallas_call(
        kernel,
        out_shape=jax.ShapeDtypeStruct((N, C, 1), jnp.float32),
        grid_spec=pltpu.PrefetchScalarGridSpec(
            num_scalar_prefetch=1,
            grid=(N, num_tiles),
            in_specs=[
                pl.BlockSpec((1, C, tile), lambda n, t, min_ref: (n, 0, t)),
                pl.BlockSpec((1, 1, tile), lambda n, t, min_ref: (n, 0, t)),
            ],
            out_specs=pl.BlockSpec((1, C, 1), lambda n, t, min_ref: (n, 0, 0)),
            scratch_shapes=[
                pltpu.VMEM((C, 1), jnp.float32),    # per-class intersection partials
                pltpu.VMEM((C, 1), jnp.float32),    # per-class union partials
            ],
        ),
        compiler_params=pltpu.CompilerParams(
            # batch axis parallel (both TCs on v7x); spatial reduction axis arbitrary
            dimension_semantics=("parallel", "arbitrary"),
            # ~6 MiB blocks double-buffered + labels: raise above v5e's 16 MiB default,
            # still within v7x's 64 MiB physical / 32 MiB scoped ceiling.
            vmem_limit_bytes=32 << 20,
        ),
    )(min_label, logits_r, labels_r)

    return -jnp.mean(out)


def miou_loss_reference(logits, labels, *, ignore_index=255):
    """Pure-JAX reference mirroring the PyTorch forward."""
    N, C, H, W = logits.shape
    labels = labels.astype(jnp.int32)
    lab = jnp.where(labels == ignore_index, jnp.min(labels), labels)
    onehot = jax.nn.one_hot(lab, C, axis=1, dtype=jnp.float32)      # (N, C, H, W)
    p = jax.nn.softmax(logits.astype(jnp.float32), axis=1)
    inter = jnp.sum((p * onehot).reshape(N, C, -1), axis=2)
    union = jnp.sum((p + onehot - p * onehot).reshape(N, C, -1), axis=2)
    return -jnp.mean(inter / union)


if __name__ == "__main__":
    key = jax.random.PRNGKey(0)
    k1, k2, k3 = jax.random.split(key, 3)

    N, C, H, W = 2, 4, 16, 16
    logits = jax.random.normal(k1, (N, C, H, W), dtype=jnp.float32)
    labels = jax.random.randint(k2, (N, H, W), 0, C, dtype=jnp.int32)
    # Sprinkle in some ignore_index pixels to exercise the replacement path.
    ignore_mask = jax.random.uniform(k3, (N, H, W)) < 0.05
    labels = jnp.where(ignore_mask, 255, labels)

    ref = jax.block_until_ready(miou_loss_reference(logits, labels, ignore_index=255))

    # 1) exact-reciprocal path, tight tolerance (whole HW in one block at this size)
    loss_exact = jax.block_until_ready(
        miou_loss(logits, labels, ignore_index=255, approx_reciprocal=False))
    assert jnp.allclose(loss_exact, ref, rtol=1e-5, atol=1e-6), (loss_exact, ref)

    # 2) default fast path (EUP approx reciprocal), loss-level tolerance
    loss = jax.block_until_ready(miou_loss(logits, labels, ignore_index=255))
    assert jnp.allclose(loss, ref, rtol=2e-3, atol=1e-3), (loss, ref)

    # 3) forced multi-tile spatial streaming (HW % tile == 0 -> no masked path emitted)
    loss_t = jax.block_until_ready(
        miou_loss(logits, labels, ignore_index=255, spatial_tile=128,
                  approx_reciprocal=False))
    assert jnp.allclose(loss_t, ref, rtol=1e-5, atol=1e-6), (loss_t, ref)

    # 4) native bf16 logits streamed without any wrapper-side upcast
    logits_bf16 = logits.astype(jnp.bfloat16)
    loss_b = jax.block_until_ready(miou_loss(logits_bf16, labels, ignore_index=255))
    ref_b = jax.block_until_ready(
        miou_loss_reference(logits_bf16.astype(jnp.float32), labels, ignore_index=255))
    assert jnp.allclose(loss_b, ref_b, rtol=2e-3, atol=1e-3), (loss_b, ref_b)

    # 5) ragged spatial extent: exercises the pl.when-gated last-tile masking path
    H2, W2 = 10, 20     # HW = 200, tile = 128 -> partial final tile
    logits2 = jax.random.normal(k1, (N, C, H2, W2), dtype=jnp.float32)
    labels2 = jax.random.randint(k2, (N, H2, W2), 0, C, dtype=jnp.int32)
    ref2 = jax.block_until_ready(miou_loss_reference(logits2, labels2, ignore_index=255))
    loss2 = jax.block_until_ready(
        miou_loss(logits2, labels2, ignore_index=255, spatial_tile=128,
                  approx_reciprocal=False))
    assert jnp.allclose(loss2, ref2, rtol=1e-5, atol=1e-6), (loss2, ref2)
    loss2_fast = jax.block_until_ready(
        miou_loss(logits2, labels2, ignore_index=255, spatial_tile=128))
    assert jnp.allclose(loss2_fast, ref2, rtol=2e-3, atol=1e-3), (loss2_fast, ref2)

    print("KERNEL_OK")
</pallas_src>

<mosaic_0001>
module attributes {stable_mosaic.version = 11 : i64} {
  func.func @_miou_kernel(%arg0: i32, %arg1: i32, %arg2: memref<1xi32, #tpu.memory_space<smem>>, %arg3: memref<1x4x256xf32, #tpu.memory_space<vmem>>, %arg4: memref<1x1x256xi32, #tpu.memory_space<vmem>>, %arg5: memref<1x4x1xf32, #tpu.memory_space<vmem>>, %arg6: memref<4x1xf32, #tpu.memory_space<vmem>>, %arg7: memref<4x1xf32, #tpu.memory_space<vmem>>) attributes {dimension_semantics = [#tpu.dimension_semantics<parallel>, #tpu.dimension_semantics<arbitrary>], iteration_bounds = array<i64: 2, 1>, scalar_prefetch = 1 : i64, scratch_operands = 2 : i64, tpu.core_type = #tpu.core_type<tc>, window_params = [{transform_indices = @transform_0, window_bounds = array<i64: 1, 4, 256>}, {transform_indices = @transform_1, window_bounds = array<i64: 1, 1, 256>}, {transform_indices = @transform_2, window_bounds = array<i64: 1, 4, 1>}]} {
    %c0_i32 = arith.constant 0 : i32
    %0 = arith.cmpi eq, %arg1, %c0_i32 : i32
    %1 = arith.extui %0 : i1 to i32
    %c0_i32_0 = arith.constant 0 : i32
    %2 = arith.cmpi ne, %1, %c0_i32_0 : i32
    scf.if %2 {
      %cst_22 = arith.constant 0.000000e+00 : f32
      %43 = vector.broadcast %cst_22 : f32 to vector<4x1xf32>
      %c0_23 = arith.constant 0 : index
      %c0_24 = arith.constant 0 : index
      %44 = vector.load %arg6[%c0_23, %c0_24] : memref<4x1xf32, #tpu.memory_space<vmem>>, vector<4x1xf32>
      tpu.vector_store %arg6[%c0_23, %c0_24], %43 {strides = array<i32>} : memref<4x1xf32, #tpu.memory_space<vmem>>, vector<4x1xf32>,
      %cst_25 = arith.constant 0.000000e+00 : f32
      %45 = vector.broadcast %cst_25 : f32 to vector<4x1xf32>
      %c0_26 = arith.constant 0 : index
      %c0_27 = arith.constant 0 : index
      %46 = vector.load %arg7[%c0_26, %c0_27] : memref<4x1xf32, #tpu.memory_space<vmem>>, vector<4x1xf32>
      tpu.vector_store %arg7[%c0_26, %c0_27], %45 {strides = array<i32>} : memref<4x1xf32, #tpu.memory_space<vmem>>, vector<4x1xf32>,
    } else {
    }
    %c0 = arith.constant 0 : index
    %c0_1 = arith.constant 0 : index
    %c0_2 = arith.constant 0 : index
    %3 = vector.load %arg3[%c0, %c0_1, %c0_2] : memref<1x4x256xf32, #tpu.memory_space<vmem>>, vector<1x4x256xf32>
    %4 = vector.shape_cast %3 : vector<1x4x256xf32> to vector<4x256xf32>
    %c0_3 = arith.constant 0 : index
    %c0_4 = arith.constant 0 : index
    %c0_5 = arith.constant 0 : index
    %5 = vector.load %arg4[%c0_3, %c0_4, %c0_5] : memref<1x1x256xi32, #tpu.memory_space<vmem>>, vector<1x1x256xi32>
    %6 = vector.shape_cast %5 : vector<1x1x256xi32> to vector<1x256xi32>
    %c255_i32 = arith.constant 255 : i32
    %7 = vector.broadcast %c255_i32 : i32 to vector<1x256xi32>
    %8 = arith.cmpi eq, %6, %7 : vector<1x256xi32>
    %c0_6 = arith.constant 0 : index
    %9 = memref.load %arg2[%c0_6] : memref<1xi32, #tpu.memory_space<smem>>
    %10 = vector.broadcast %9 : i32 to vector<1x256xi32>
    %11 = arith.select %8, %10, %6 : vector<1x256xi1>, vector<1x256xi32>
    %cst = arith.constant dense<0xFF800000> : vector<256xf32>
    %12 = vector.multi_reduction <maximumf>, %4, %cst [0] : vector<4x256xf32> to vector<256xf32>
    %13 = vector.shape_cast %12 : vector<256xf32> to vector<1x256xf32>
    %14 = vector.broadcast %13 : vector<1x256xf32> to vector<4x256xf32>
    %15 = arith.subf %4, %14 : vector<4x256xf32>
    %16 = math.exp %15 : vector<4x256xf32>
    %cst_7 = arith.constant dense<0.000000e+00> : vector<256xf32>
    %17 = vector.multi_reduction <add>, %16, %cst_7 [0] : vector<4x256xf32> to vector<256xf32>
    %18 = vector.shape_cast %17 : vector<256xf32> to vector<1x256xf32>
    %19 = tpu.reciprocal %18 : vector<1x256xf32> -> vector<1x256xf32>
    %20 = vector.broadcast %19 : vector<1x256xf32> to vector<4x256xf32>
    %21 = arith.mulf %16, %20 : vector<4x256xf32>
    %22 = tpu.iota {dimensions = array<i32: 0>} : vector<4x1xi32>
    %23 = vector.broadcast %22 : vector<4x1xi32> to vector<4x256xi32>
    %24 = vector.broadcast %11 : vector<1x256xi32> to vector<4x256xi32>
    %25 = arith.cmpi eq, %23, %24 : vector<4x256xi32>
    %c0_8 = arith.constant 0 : index
    %c0_9 = arith.constant 0 : index
    %26 = vector.load %arg6[%c0_8, %c0_9] : memref<4x1xf32, #tpu.memory_space<vmem>>, vector<4x1xf32>
    %cst_10 = arith.constant 0.000000e+00 : f32
    %27 = vector.broadcast %cst_10 : f32 to vector<4x256xf32>
    %28 = arith.select %25, %21, %27 : vector<4x256xi1>, vector<4x256xf32>
    %cst_11 = arith.constant dense<0.000000e+00> : vector<4xf32>
    %29 = vector.multi_reduction <add>, %28, %cst_11 [1] : vector<4x256xf32> to vector<4xf32>
    %30 = vector.shape_cast %29 : vector<4xf32> to vector<4x1xf32>
    %31 = arith.addf %26, %30 : vector<4x1xf32>
    %c0_12 = arith.constant 0 : index
    %c0_13 = arith.constant 0 : index
    %32 = vector.load %arg6[%c0_12, %c0_13] : memref<4x1xf32, #tpu.memory_space<vmem>>, vector<4x1xf32>
    tpu.vector_store %arg6[%c0_12, %c0_13], %31 {strides = array<i32>} : memref<4x1xf32, #tpu.memory_space<vmem>>, vector<4x1xf32>,
    %c0_14 = arith.constant 0 : index
    %c0_15 = arith.constant 0 : index
    %33 = vector.load %arg7[%c0_14, %c0_15] : memref<4x1xf32, #tpu.memory_space<vmem>>, vector<4x1xf32>
    %cst_16 = arith.constant 1.000000e+00 : f32
    %34 = vector.broadcast %cst_16 : f32 to vector<4x256xf32>
    %35 = arith.select %25, %34, %21 : vector<4x256xi1>, vector<4x256xf32>
    %cst_17 = arith.constant dense<0.000000e+00> : vector<4xf32>
    %36 = vector.multi_reduction <add>, %35, %cst_17 [1] : vector<4x256xf32> to vector<4xf32>
    %37 = vector.shape_cast %36 : vector<4xf32> to vector<4x1xf32>
    %38 = arith.addf %33, %37 : vector<4x1xf32>
    %c0_18 = arith.constant 0 : index
    %c0_19 = arith.constant 0 : index
    %39 = vector.load %arg7[%c0_18, %c0_19] : memref<4x1xf32, #tpu.memory_space<vmem>>, vector<4x1xf32>
    tpu.vector_store %arg7[%c0_18, %c0_19], %38 {strides = array<i32>} : memref<4x1xf32, #tpu.memory_space<vmem>>, vector<4x1xf32>,
    %c0_i32_20 = arith.constant 0 : i32
    %40 = arith.cmpi eq, %arg1, %c0_i32_20 : i32
    %41 = arith.extui %40 : i1 to i32
    %c0_i32_21 = arith.constant 0 : i32
    %42 = arith.cmpi ne, %41, %c0_i32_21 : i32
    scf.if %42 {
      %c0_22 = arith.constant 0 : index
      %c0_23 = arith.constant 0 : index
      %43 = vector.load %arg6[%c0_22, %c0_23] : memref<4x1xf32, #tpu.memory_space<vmem>>, vector<4x1xf32>
      %c0_24 = arith.constant 0 : index
      %c0_25 = arith.constant 0 : index
      %44 = vector.load %arg7[%c0_24, %c0_25] : memref<4x1xf32, #tpu.memory_space<vmem>>, vector<4x1xf32>
      %45 = arith.divf %43, %44 : vector<4x1xf32>
      %c0_26 = arith.constant 0 : index
      %c0_27 = arith.constant 0 : index
      %c0_28 = arith.constant 0 : index
      %46 = vector.load %arg5[%c0_26, %c0_27, %c0_28] : memref<1x4x1xf32, #tpu.memory_space<vmem>>, vector<1x4x1xf32>
      %47 = vector.shape_cast %46 : vector<1x4x1xf32> to vector<4x1xf32>
      %48 = vector.shape_cast %45 : vector<4x1xf32> to vector<1x4x1xf32>
      tpu.vector_store %arg5[%c0_26, %c0_27, %c0_28], %48 {strides = array<i32>} : memref<1x4x1xf32, #tpu.memory_space<vmem>>, vector<1x4x1xf32>,
    } else {
    }
    return
  }
  func.func @transform_0(%arg0: i32, %arg1: i32, %arg2: memref<1xi32, #tpu.memory_space<smem>>) -> (i32, i32, i32) {
    %c0_i32 = arith.constant 0 : i32
    %c0_i32_0 = arith.constant 0 : i32
    return %arg0, %c0_i32, %arg1 : i32, i32, i32
  }
  func.func @transform_1(%arg0: i32, %arg1: i32, %arg2: memref<1xi32, #tpu.memory_space<smem>>) -> (i32, i32, i32) {
    %c0_i32 = arith.constant 0 : i32
    %c0_i32_0 = arith.constant 0 : i32
    return %arg0, %c0_i32, %arg1 : i32, i32, i32
  }
  func.func @transform_2(%arg0: i32, %arg1: i32, %arg2: memref<1xi32, #tpu.memory_space<smem>>) -> (i32, i32, i32) {
    %c0_i32 = arith.constant 0 : i32
    %c0_i32_0 = arith.constant 0 : i32
    %c0_i32_1 = arith.constant 0 : i32
    return %arg0, %c0_i32, %c0_i32_0 : i32, i32, i32
  }
}

</mosaic_0001>

<bundles_post_ra>
// kernel: tpu_custom_call.1
= control target key start
LH: loop header
LB: loop body
LE: loop exit
PB: predicated region body
PF: predicated region fallthrough
CT: control target
= control target key end

     0   :  { %s828_s0 = inlined_call_operand.<no memory space> [shape: s32[1], index: 0, kind: input, shape index: {}]   ;;  %s829_s1 = inlined_call_operand.hbm [shape: f32[2,4,256], index: 1, kind: input, shape index: {}]   ;;  %s830_s2 = inlined_call_operand.hbm [shape: s32[2,1,256], index: 2, kind: input, shape index: {}]   ;;  %s831_s3 = inlined_call_operand.vmem [shape: f32[2,4,1], index: 3, kind: output, shape index: {}]  }
   0x1   :  { %8 = sst [smem:[#allocation5]] %s828_s0 }
   0x2   :  { %9 = vsyncpa [#allocation7], 0 }
   0x3   :  { %11 = vsyncpa [#allocation7 + $0x1], 0 }
   0x4   :  { %12 = vsyncpa [#allocation9], 0 }
   0x5   :  { %14 = vsyncpa [#allocation9 + $0x1], 0  ;;  %s706_s14 = smov 0   ;;  %s708_s15 = smov 0  }
   0x6   :  { %s710_s16 = smov 0   ;;  %s712_s17 = smov 0  }
   0x7   :  { %s714_s18 = smov 0   ;;  %s716_s19 = smov 0  }
   0x8 LB: > { %s481_s0 = sadd.s32 4294967295, %s680_s19   ;;  %s32_s20 = sadd.s32 1, %s676_s18  ;;  %s680_s19 = sphi %s716_s19, %s20_s19   ;;  %s676_s18 = sphi %s714_s18, %s839_s18   ;;  %s672_s17 = sphi %s712_s17, %s838_s17   ;;  %s668_s16 = sphi %s710_s16, %s837_s16   ;;  %s664_s15 = sphi %s708_s15, %s836_s15   ;;  %s660_s14 = sphi %s706_s14, %s835_s14  }
   0x9   : > { %p34_p0 = scmp.ge.s32.totalorder %s32_s20, 2  ;;  %s41_s21 = sadd.s32 1, %s668_s16 }
   0xa   : > { %p48_p1 = scmp.ne.s32.totalorder %s668_s16, %s664_s15  ;;  %p49_p2 = scmp.eq.s32.totalorder %s680_s19, 0 }
   0xb   : > { %s841_s20 = smov (%p34_p0, %s32_s20), 0  ;;  %p54_p4 = scmp.ne.s32.totalorder %s664_s15, %s660_s14 }
   0xc   : > { %p742_p3 = por %p49_p2, %p48_p1  ;;  %s36_s23 = ssub.s32 %s676_s18, %s841_s20 }
   0xd   : > { %p55_p5 = scmp.eq.s32.totalorder %s481_s0, 0  ;;  %p39_p6 = scmp.eq.s32.totalorder %s36_s23, 0 }
   0xe   : > { %p508_p8 = scmp.lt.s32.totalorder %s680_s19, 2  ;;  %s132_s26 = sand.u32 1, %s668_s16  }
   0xf   : > { %p749_p7 = por %p55_p5, %p54_p4  ;;  %s496_s27 = sshll.u32 %s676_s18, 3 }
  0x10   : > { %s755_s25 = scalar_select %p39_p6, %s668_s16, %s41_s21  }
  0x11   : > { %s485_s28 = sshll.u32 %s132_s26, 3  ;;  %s143_s4 = scalar_lea.hbm %s829_s1, %s496_s27 }
  0x12   : > { %s145_s5 = sshll.u32 %s143_s4, 4  ;;  %s136_s6 = scalar_lea.vmem [#allocation6], %s485_s28  ;;  %s146_s5 = int_to_ptr.hbm [resolvable:$true] %s145_s5 }
  0x13   : > { %s147_s7 = sshll.u32 %s136_s6, 4  ;;  %p764_p9 = pnand %p508_p8, %p742_p3  ;;  %s148_s7 = int_to_ptr.vmem [resolvable:$true] %s147_s7 }
  0x14   : > { %p490_p10 = scmp.ge.s32.totalorder %s680_s19, 1  ;;  %p173_p11 = scmp.lt.s32.totalorder %s680_s19, 3 }
  0x15   : > { %s488_s9 = sshll.u32 %s132_s26, 1  ;;  %s133_s10 = scalar_lea.sflag [#allocation7], %s132_s26 }
  0x16   : > { %504 = dma.hbm_to_vmem [thread:$0]  (!%p764_p9), %s146_s5, 128, %s148_s7, %s133_s10  }
  0x17   : > { %p174_p12 = pnand %p490_p10, %p173_p11  ;;  %s489_s11 = sshll.u32 %s676_s18, 1 }
  0x18   : > { %s158_s12 = scalar_lea.vmem [#allocation8], %s488_s9  ;;  %s164_s21 = scalar_lea.hbm %s830_s2, %s489_s11 }
  0x19   : > { %s168_s13 = sshll.u32 %s158_s12, 4  ;;  %s166_s22 = sshll.u32 %s164_s21, 4  ;;  %s169_s13 = int_to_ptr.vmem [resolvable:$true] %s168_s13  ;;  %s167_s22 = int_to_ptr.hbm [resolvable:$true] %s166_s22 }
  0x1a   : > { %s155_s23 = scalar_lea.sflag [#allocation9], %s132_s26  ;;  %177 = sbr.rel (%p174_p12) target bundleno = 281 (0x119), region = 28 }
  0x1b   : > { %507 = dma.hbm_to_vmem [thread:$0]  (!%p764_p9), %s167_s22, 32, %s169_s13, %s155_s23  }
  0x1c   : > { %s179_s27 = sand.u32 (!%p174_p12), 1, %s664_s15  }
  0x1d   : > { %s491_s28 = sshll.u32 (!%p174_p12), %s179_s27, 3  ;;  %s180_s29 = scalar_lea.sflag (!%p174_p12), [#allocation7], %s179_s27 }
  0x1e   : > { %s183_s30 = scalar_lea.vmem (!%p174_p12), [#allocation6], %s491_s28 }
  0x1f   : > { %651 = dma.done.wait (%p749_p7), %s180_s29, 128  }
  0x20   : > { %653 = vsyncadd (%p749_p7), %s180_s29, 4294967168  ;;  %s492_s4 = sshll.u32 %s179_s27, 1  ;;  %s190_s5 = scalar_lea.sflag [#allocation9], %s179_s27 }
  0x21   : > { %s783_s6 = scalar_lea.vmem [#allocation8], %s492_s4 }
  0x22   : > { %655 = dma.done.wait (%p749_p7), %s190_s5, 32  }
  0x23   : > { %657 = vsyncadd (%p749_p7), %s190_s5, 4294967264  ;;  %v232_v0 = vld [vmem:[%s183_s30] sm:$0xff]  ;;  %vm244_vm0 = vcmask 1043456   ;;  %s235_s24 = sld [smem:[#allocation5]]  ;;  %vm229_vm9 = vcmask 3072   ;;  %v682_v60 = vmov 0.0  }
  0x24   : > { %239 = vst [vmem:[#allocation1] ss:$2 sm:$0xff] %v232_v0  ;;  %v233_v62 = vld [vmem:[%s783_s6] sm:$0x3]  ;;  %p221_p13 = scmp.lt.s32.totalorder %s672_s17, 1 }
  0x25   : > { %231 = vst.msk [vmem:[#allocation3] sm:$0xf] %vm229_vm9, %v682_v60  ;;  %vm234_vm10 = vcmp.eq.s32.totalorder %v233_v62, 255 }
  0x26   : > { %230 = vst.msk [vmem:[#allocation2] sm:$0xf] %vm229_vm9, %v682_v60  ;;  %s843_s17 = smov (!%p221_p13, %s672_s17), 1 }
  0x27   : > { %s493_s26 = sshll.u32 %s843_s17, 2 }
  0x28   : > { %s224_s9 = scalar_lea.vmem %s831_s3, %s493_s26 }
  0x29   : > { %v236_v63 = vstv %s235_s24 }
  0x2b   : > { %v240_v1 = vld.sshfl [vmem:[#allocation1] sm:$0xff pattern:$0x75316420]  ;;  %v241_v2 = vld.sshfl [vmem:[#allocation1 + $0x8] sm:$0xff pattern:$0x75316420] }
  0x2c   : > { %v245_v3 = vsel %vm244_vm0, %v240_v1, -inf  ;;  %v252_v4 = vsel %vm244_vm0, %v241_v2, -inf  ;;  %v237_v1 = vsel %vm234_vm10, %v236_v63, %v233_v62 }
  0x2d   : > { %v246_v5 = vrot.slane %v245_v3, 4  ;;  %v253_v6 = vrot.slane %v252_v4, 4 }
  0x2f   : > { %v247_v7 = vmax.f32 %v245_v3, %v246_v5  ;;  %v254_v8 = vmax.f32 %v252_v4, %v253_v6  ;;  %v323_v5 = vperm.slane %v237_v1, 0  ;;  %v324_v6 = vperm.slane %v237_v1, 1 }
  0x31   : > { %v248_v9 = vrot.slane %v247_v7, 2  ;;  %v255_v10 = vrot.slane %v254_v8, 2 }
  0x33   : > { %v249_v11 = vmax.f32 %v247_v7, %v248_v9  ;;  %v256_v12 = vmax.f32 %v254_v8, %v255_v10 }
  0x35   : > { %v250_v13 = vrot.slane %v249_v11, 1  ;;  %v257_v14 = vrot.slane %v256_v12, 1 }
  0x37   : > { %v251_v15 = vmax.f32 %v249_v11, %v250_v13  ;;  %v258_v16 = vmax.f32 %v256_v12, %v257_v14 }
  0x39   : > { %v261_v17 = vrot.slane %v258_v16, 4 }
  0x3b   : > { %v262_v18 = vsel %vm244_vm0, %v251_v15, %v261_v17 }
  0x3c   : > { %v264_v19 = vsub.f32 %v232_v0, %v262_v18  ;;  %v321_v0 = vlaneseq }
  0x3e   : > { %v265_v20 = vmul.f32 1.442695, %v264_v19  ;;  %v322_v4 = vshrl.u32 %v321_v0, 7  ;;  %v344_v19 = vld [vmem:[#allocation3] sm:$0xf] }
  0x40   : > { %558 = vpow2.f32 %v265_v20  ;;  %vm325_vm11 = vcmp.eq.s32.totalorder %v322_v4, %v323_v5  ;;  %vm326_vm12 = vcmp.eq.s32.totalorder %v322_v4, %v324_v6 }
  0x46   : > { %v559_v21 = vpop.eup %558 }
  0x47   : > { %268 = vst [vmem:[#allocation1] ss:$2 sm:$0xff] %v559_v21 }
  0x4e   : > { %v269_v22 = vld.sshfl [vmem:[#allocation1] sm:$0xff pattern:$0x75316420]  ;;  %v270_v23 = vld.sshfl [vmem:[#allocation1 + $0x8] sm:$0xff pattern:$0x75316420] }
  0x4f   : > { %v273_v24 = vsel %vm244_vm0, %v269_v22, 0.0  ;;  %v280_v25 = vsel %vm244_vm0, %v270_v23, 0.0  ;;  %v327_v22 = vld [vmem:[#allocation2] sm:$0xf] }
  0x50   : > { %v274_v26 = vrot.slane %v273_v24, 4  ;;  %v281_v27 = vrot.slane %v280_v25, 4 }
  0x52   : > { %v275_v28 = vadd.f32 %v274_v26, %v273_v24  ;;  %v282_v29 = vadd.f32 %v281_v27, %v280_v25 }
  0x54   : > { %v276_v30 = vrot.slane %v275_v28, 2  ;;  %v283_v31 = vrot.slane %v282_v29, 2 }
  0x56   : > { %v277_v32 = vadd.f32 %v276_v30, %v275_v28  ;;  %v284_v33 = vadd.f32 %v283_v31, %v282_v29 }
  0x58   : > { %v278_v34 = vrot.slane %v277_v32, 1  ;;  %v285_v35 = vrot.slane %v284_v33, 1 }
  0x5a   : > { %v279_v36 = vadd.f32 %v278_v34, %v277_v32  ;;  %v286_v37 = vadd.f32 %v285_v35, %v284_v33 }
  0x5c   : > { %560 = vrcp.f32 %v279_v36  ;;  %vm292_vm1 = vweird.f32 %v279_v36  ;;  %v296_v41 = vand.u32 2147483647, %v279_v36  ;;  %v298_v44 = vand.u32 2147483648, %v279_v36 }
  0x5d   : > { %562 = vrcp.f32 %v286_v37  ;;  %v312_v45 = vand.u32 2147483648, %v286_v37  ;;  %vm306_vm3 = vweird.f32 %v286_v37  ;;  %v310_v47 = vand.u32 2147483647, %v286_v37 }
  0x5e   : > { %v299_v51 = vor.u32 1.1754944e-38, %v298_v44  ;;  %vm297_vm7 = vcmp.eq.f32.partialorder %v296_v41, 8.507059e+37 }
  0x5f   : > { %v313_v52 = vor.u32 1.1754944e-38, %v312_v45  ;;  %vm311_vm8 = vcmp.eq.f32.partialorder %v310_v47, 8.507059e+37 }
  0x62   : > { %v561_v38 = vpop.eup %560 }
  0x63   : > { %v563_v39 = vpop.eup %562  ;;  %v288_v40 = vmul.f32 %v561_v38, %v279_v36  ;;  %vm293_vm2 = vweird.f32 %v561_v38 }
  0x64   : > { %v302_v42 = vmul.f32 %v563_v39, %v286_v37  ;;  %vm307_vm4 = vweird.f32 %v563_v39  ;;  %vm294_vm5 = vmor %vm292_vm1, %vm293_vm2 }
  0x65   : > { %v289_v43 = vsub.f32 1.0, %v288_v40  ;;  %vm308_vm6 = vmor %vm306_vm3, %vm307_vm4 }
  0x66   : > { %v303_v46 = vsub.f32 1.0, %v302_v42 }
  0x67   : > { %v290_v48 = vmul.f32 %v561_v38, %v289_v43 }
  0x68   : > { %v304_v49 = vmul.f32 %v563_v39, %v303_v46 }
  0x69   : > { %v291_v50 = vadd.f32 %v561_v38, %v290_v48 }
  0x6a   : > { %v305_v53 = vadd.f32 %v563_v39, %v304_v49 }
  0x6b   : > { %v295_v54 = vsel %vm294_vm5, %v561_v38, %v291_v50 }
  0x6c   : > { %v309_v55 = vsel %vm308_vm6, %v563_v39, %v305_v53  ;;  %v300_v56 = vsel %vm297_vm7, %v299_v51, %v295_v54 }
  0x6d   : > { %v314_v57 = vsel %vm311_vm8, %v313_v52, %v309_v55 }
  0x6e   : > { %v317_v58 = vrot.slane %v314_v57, 4 }
  0x70   : > { %v318_v59 = vsel %vm244_vm0, %v300_v56, %v317_v58 }
  0x71   : > { %v320_v61 = vmul.f32 %v559_v21, %v318_v59 }
  0x73   : > { %329 = vst [vmem:[#allocation1] ss:$2 sm:$0xff] %v320_v61 }
  0x7a   : > { %v330_v2 = vld.sshfl [vmem:[#allocation1] sm:$0xff pattern:$0x75316420]  ;;  %v331_v3 = vld.sshfl [vmem:[#allocation1 + $0x8] sm:$0xff pattern:$0x75316420] }
  0x7b   : > { %345 = vst [vmem:[#allocation1] ss:$2 sm:$0xff] %v320_v61  ;;  %v334_v14 = vsel %vm325_vm11, %v330_v2, 0.0  ;;  %v335_v15 = vsel %vm326_vm12, %v331_v3, 0.0 }
  0x7c   : > { %v336_v16 = vsel %vm244_vm0, %v334_v14, 0.0  ;;  %v337_v17 = vsel %vm244_vm0, %v335_v15, 0.0 }
  0x7d   : > { %v338_v18 = vadd.f32 %v337_v17, %v336_v16 }
  0x82   : > { %v346_v7 = vld.sshfl [vmem:[#allocation1] sm:$0xff pattern:$0x75316420]  ;;  %v347_v8 = vld.sshfl [vmem:[#allocation1 + $0x8] sm:$0xff pattern:$0x75316420] }
  0x83   : > { %v350_v9 = vsel %vm325_vm11, 1.0, %v346_v7  ;;  %v351_v10 = vsel %vm326_vm12, 1.0, %v347_v8 }
  0x84   : > { %v352_v11 = vsel %vm244_vm0, %v350_v9, 0.0  ;;  %v353_v12 = vsel %vm244_vm0, %v351_v10, 0.0 }
  0x85   : > { %v354_v13 = vadd.f32 %v353_v12, %v352_v11 }
  0x87   : > { %355 = vadd.xlane.f32.xlu0 %v354_v13 }
  0x8f   : > { %339 = vadd.xlane.f32.xlu0 %v338_v18 }
  0xfa   : > { %v356_v20 = vpop.xlane.xlu0 %355 }
  0xfb   : > { %v357_v21 = vadd.f32 %v356_v20, %v344_v19 }
  0xfd   : > { %358 = vst.msk [vmem:[#allocation3] sm:$0xf] %vm229_vm9, %v357_v21 }
 0x102   : > { %v340_v23 = vpop.xlane.xlu0 %339 }
 0x103   : > { %v341_v24 = vadd.f32 %v340_v23, %v327_v22 }
 0x104   : > { %v363_v25 = vld [vmem:[#allocation3] sm:$0xf] }
 0x105   : > { %564 = vrcp.f32 %v363_v25  ;;  %343 = vst.msk [vmem:[#allocation2] sm:$0xf] %vm229_vm9, %v341_v24  ;;  %v375_v29 = vand.u32 2147483648, %v363_v25  ;;  %v373_v31 = vand.u32 2147483647, %v363_v25  ;;  %vm369_vm14 = vweird.f32 %v363_v25 }
 0x107   : > { %v376_v34 = vor.u32 1.1754944e-38, %v375_v29  ;;  %vm374_vm0 = vcmp.eq.f32.partialorder %v373_v31, 8.507059e+37 }
 0x10b   : > { %v565_v26 = vpop.eup %564 }
 0x10c   : > { %v365_v27 = vmul.f32 %v565_v26, %v363_v25  ;;  %vm370_vm13 = vweird.f32 %v565_v26  ;;  %v362_v33 = vld [vmem:[#allocation2] sm:$0xf] }
 0x10d   : > { %vm371_vm15 = vmor %vm369_vm14, %vm370_vm13 }
 0x10e   : > { %v366_v28 = vsub.f32 1.0, %v365_v27 }
 0x110   : > { %v367_v30 = vmul.f32 %v565_v26, %v366_v28 }
 0x112   : > { %v368_v32 = vadd.f32 %v565_v26, %v367_v30 }
 0x114   : > { %v372_v35 = vsel %vm371_vm15, %v565_v26, %v368_v32 }
 0x115   : > { %v377_v36 = vsel %vm374_vm0, %v376_v34, %v372_v35 }
 0x116   : > { %v378_v37 = vmul.f32 %v377_v36, %v362_v33 }
 0x118   : > { %379 = vst.msk [vmem:[%s224_s9] sm:$0xf] %vm229_vm9, %v378_v37 }
 0x119 PF: > { %s20_s19 = sadd.s32 1, %s680_s19   ;;  %s835_s14 = smov %s664_s15 }
 0x11a   : > { %p17_p0 = scmp.ge.s32.totalorder %s20_s19, 4   ;;  %s836_s15 = smov %s668_s16 }
 0x11b   : > { %s837_s16 = smov %s755_s25  ;;  %s838_s17 = smov %s676_s18 }
 0x11c   : > { %s839_s18 = smov %s841_s20  ;;  %19 = sbr.rel (!%p17_p0) target bundleno = 8 (0x8), region = 89 }
 0x121   :  { %399 = vsyncpa [#allocation7], 1 }
 0x122   :  { %401 = vsyncpa [#allocation7 + $0x1], 1 }
 0x123   :  { %402 = vsyncpa [#allocation9], 1 }
 0x124   :  { %404 = vsyncpa [#allocation9 + $0x1], 1 }

</bundles_post_ra>
